<compile_context>
chip_gen: v7x
topology: tpu7x:2x2x1
jax: 0.10.0
libtpu: 0.0.40
codegen_flags: <defaults>
</compile_context>

<pallas_src>
import functools

import jax
import jax.numpy as jnp
from jax.experimental import pallas as pl
from jax.experimental.pallas import tpu as pltpu

LANE = 128


def _round_up(n, m):
    return ((n + m - 1) // m) * m


def _pad2d(a, shape):
    return jnp.pad(a, ((0, shape[0] - a.shape[0]), (0, shape[1] - a.shape[1])))


def prepare_params(params):
    """One-time parameter prep (pad hidden widths to 128 lanes, cast to bf16).

    Zero-padding preserves the math: padded columns stay exactly zero through
    ReLU(0 + 0) == 0 and contribute nothing to downstream matmuls. The final
    layer keeps its true num_classes column count (narrow-C output)."""
    num_classes = params["w4"].shape[1]
    return {
        "w1": params["w1"].astype(jnp.bfloat16),                         # (in, 128)
        "b1": params["b1"].astype(jnp.float32),                          # (1, 128)
        "w2": _pad2d(params["w2"], (LANE, LANE)).astype(jnp.bfloat16),   # (128, 128)
        "b2": _pad2d(params["b2"], (1, LANE)).astype(jnp.float32),
        "w3": _pad2d(params["w3"], (LANE, LANE)).astype(jnp.bfloat16),   # (128, 128)
        "b3": _pad2d(params["b3"], (1, LANE)).astype(jnp.float32),
        "w4": _pad2d(params["w4"], (LANE, num_classes)).astype(jnp.bfloat16),
        "b4": params["b4"].astype(jnp.float32),                          # (1, C)
    }


def _select_batch_tile(B, max_batch_tile):
    """Pick a batch tile that (a) never pads B by more than one 16-row group,
    (b) yields >= 2 grid steps when B permits (v7x megacore split), and
    (c) grows up to max_batch_tile for large B to amortize grid overhead."""
    aligned_B = _round_up(B, 16)
    if aligned_B >= 32:
        tile = max(16, (aligned_B // 2 // 16) * 16)   # >=2 tiles, minimal padding
    else:
        tile = aligned_B
    return min(max_batch_tile, tile)


def mlp_kernel(x_ref,
               w1_ref, b1_ref,
               w2_ref, b2_ref,
               w3_ref, b3_ref,
               w4_ref, b4_ref,
               o_ref):
    # Hoist all weight/bias loads ahead of the serial matmul chain so the
    # scheduler can overlap layer-(k+1) vld's under layer-k MXU work.
    w1 = w1_ref[...]
    w2 = w2_ref[...]
    w3 = w3_ref[...]
    w4 = w4_ref[...]
    b1 = b1_ref[...]
    b2 = b2_ref[...]
    b3 = b3_ref[...]
    b4 = b4_ref[...]

    # x arrives f32 from HBM; cast to bf16 in-kernel (hides under MXU work).
    x = x_ref[...].astype(jnp.bfloat16)          # (batch_tile, input_size)

    # bf16 MXU inputs, f32 accumulation; bias-add + ReLU stay in f32.
    h1 = jnp.dot(x, w1, preferred_element_type=jnp.float32) + b1
    h1 = jnp.maximum(h1, 0.0).astype(jnp.bfloat16)

    h2 = jnp.dot(h1, w2, preferred_element_type=jnp.float32) + b2
    h2 = jnp.maximum(h2, 0.0).astype(jnp.bfloat16)

    h3 = jnp.dot(h2, w3, preferred_element_type=jnp.float32) + b3
    h3 = jnp.maximum(h3, 0.0).astype(jnp.bfloat16)

    out = jnp.dot(h3, w4, preferred_element_type=jnp.float32) + b4
    o_ref[...] = out.astype(o_ref.dtype)         # (batch_tile, num_classes) f32


@functools.partial(jax.jit, static_argnames=("max_batch_tile",))
def simplest_cnn1d_forward(x, prepped, max_batch_tile=2048):
    """x: (B, input_size) float32. prepped: output of prepare_params()."""
    B, input_size = x.shape
    num_classes = prepped["w4"].shape[1]

    # --- batch tiling clamped to the workload ---
    batch_tile = _select_batch_tile(B, max_batch_tile)
    num_tiles = pl.cdiv(B, batch_tile)
    padded_B = num_tiles * batch_tile
    if padded_B != B:
        x = jnp.pad(x, ((0, padded_B - B), (0, 0)))

    def full(shape):
        # Constant index map -> weights stay VMEM-resident across grid steps.
        return pl.BlockSpec(shape, lambda i: (0, 0))

    flops = int(2 * padded_B * (input_size * LANE + LANE * LANE + LANE * LANE
                                + LANE * num_classes))
    bytes_accessed = int(
        padded_B * input_size * 4                       # x f32 stream
        + padded_B * num_classes * 4                    # narrow-C f32 writeback
        + sum(int(prepped[k].size) * 2 for k in ("w1", "w2", "w3", "w4"))
        + sum(int(prepped[k].size) * 4 for k in ("b1", "b2", "b3", "b4")))

    out = pl.pallas_call(
        mlp_kernel,
        out_shape=jax.ShapeDtypeStruct((padded_B, num_classes), jnp.float32),
        grid_spec=pltpu.PrefetchScalarGridSpec(
            num_scalar_prefetch=0,
            grid=(num_tiles,),
            in_specs=[
                pl.BlockSpec((batch_tile, input_size), lambda i: (i, 0)),
                full(prepped["w1"].shape), full(prepped["b1"].shape),
                full(prepped["w2"].shape), full(prepped["b2"].shape),
                full(prepped["w3"].shape), full(prepped["b3"].shape),
                full(prepped["w4"].shape), full(prepped["b4"].shape),
            ],
            # Narrow-C out block: last dim == full array dim, so it is exempt
            # from the 128-divisibility rule; no padded logit lanes are written.
            out_specs=pl.BlockSpec((batch_tile, num_classes), lambda i: (i, 0)),
        ),
        compiler_params=pltpu.CompilerParams(
            dimension_semantics=("parallel",)),
        cost_estimate=pl.CostEstimate(
            flops=flops, transcendentals=0, bytes_accessed=bytes_accessed),
    )(x,
      prepped["w1"], prepped["b1"],
      prepped["w2"], prepped["b2"],
      prepped["w3"], prepped["b3"],
      prepped["w4"], prepped["b4"])

    # Only drop padded batch rows (no column slice needed with narrow-C out).
    if padded_B != B:
        out = out[:B]
    return out


def init_params(key, input_size, num_classes):
    """Mimics nn.Linear's uniform(-1/sqrt(fan_in), 1/sqrt(fan_in)) init.
    Weights stored pre-transposed as (in_features, out_features)."""
    dims = [(input_size, 128), (128, 64), (64, 32), (32, num_classes)]
    params = {}
    for idx, (fan_in, fan_out) in enumerate(dims, start=1):
        key, kw, kb = jax.random.split(key, 3)
        bound = 1.0 / jnp.sqrt(jnp.float32(fan_in))
        params[f"w{idx}"] = jax.random.uniform(
            kw, (fan_in, fan_out), jnp.float32, -bound, bound)
        params[f"b{idx}"] = jax.random.uniform(
            kb, (1, fan_out), jnp.float32, -bound, bound)
    return params


def reference_forward(x, params):
    """Same math as the kernel: bf16 matmul inputs, f32 accumulation/epilogue."""
    h = x
    for idx in range(1, 4):
        w = params[f"w{idx}"].astype(jnp.bfloat16)
        h = jnp.dot(h.astype(jnp.bfloat16), w,
                    preferred_element_type=jnp.float32) + params[f"b{idx}"]
        h = jnp.maximum(h, 0.0)
    return (jnp.dot(h.astype(jnp.bfloat16), params["w4"].astype(jnp.bfloat16),
                    preferred_element_type=jnp.float32) + params["b4"])


if __name__ == "__main__":
    key = jax.random.PRNGKey(0)
    batch, input_size, num_classes = 32, 32, 10

    key, kx, kp = jax.random.split(key, 3)
    # Module does x.view(B, -1); we supply the already-flattened (B, input_size).
    x = jax.random.normal(kx, (batch, input_size), jnp.float32)
    params = init_params(kp, input_size, num_classes)

    # One-time parameter prep (pad + cast) outside the jitted forward.
    prepped = jax.tree_util.tree_map(jax.block_until_ready, prepare_params(params))

    out = simplest_cnn1d_forward(x, prepped)
    out = jax.block_until_ready(out)

    ref = reference_forward(x, params)
    assert out.shape == (batch, num_classes)
    assert jnp.allclose(out, ref, atol=2e-3, rtol=2e-3), "mismatch vs reference"
    print("KERNEL_OK")
</pallas_src>

<mosaic_0001>
module attributes {stable_mosaic.version = 11 : i64} {
  func.func @mlp_kernel(%arg0: i32, %arg1: memref<16x32xf32, #tpu.memory_space<vmem>>, %arg2: memref<32x128xbf16, #tpu.memory_space<vmem>>, %arg3: memref<1x128xf32, #tpu.memory_space<vmem>>, %arg4: memref<128x128xbf16, #tpu.memory_space<vmem>>, %arg5: memref<1x128xf32, #tpu.memory_space<vmem>>, %arg6: memref<128x128xbf16, #tpu.memory_space<vmem>>, %arg7: memref<1x128xf32, #tpu.memory_space<vmem>>, %arg8: memref<128x10xbf16, #tpu.memory_space<vmem>>, %arg9: memref<1x10xf32, #tpu.memory_space<vmem>>, %arg10: memref<16x10xf32, #tpu.memory_space<vmem>>) attributes {dimension_semantics = [#tpu.dimension_semantics<parallel>], iteration_bounds = array<i64: 2>, scalar_prefetch = 0 : i64, scratch_operands = 0 : i64, tpu.core_type = #tpu.core_type<tc>, window_params = [{transform_indices = @transform_0, window_bounds = array<i64: 16, 32>}, {pipeline_mode = #tpu.pipeline_mode<synchronous>, transform_indices = @transform_1, window_bounds = array<i64: 32, 128>}, {pipeline_mode = #tpu.pipeline_mode<synchronous>, transform_indices = @transform_2, window_bounds = array<i64: 1, 128>}, {pipeline_mode = #tpu.pipeline_mode<synchronous>, transform_indices = @transform_3, window_bounds = array<i64: 128, 128>}, {pipeline_mode = #tpu.pipeline_mode<synchronous>, transform_indices = @transform_4, window_bounds = array<i64: 1, 128>}, {pipeline_mode = #tpu.pipeline_mode<synchronous>, transform_indices = @transform_5, window_bounds = array<i64: 128, 128>}, {pipeline_mode = #tpu.pipeline_mode<synchronous>, transform_indices = @transform_6, window_bounds = array<i64: 1, 128>}, {pipeline_mode = #tpu.pipeline_mode<synchronous>, transform_indices = @transform_7, window_bounds = array<i64: 128, 10>}, {pipeline_mode = #tpu.pipeline_mode<synchronous>, transform_indices = @transform_8, window_bounds = array<i64: 1, 10>}, {transform_indices = @transform_9, window_bounds = array<i64: 16, 10>}]} {
    %c0 = arith.constant 0 : index
    %c0_0 = arith.constant 0 : index
    %0 = vector.load %arg2[%c0, %c0_0] : memref<32x128xbf16, #tpu.memory_space<vmem>>, vector<32x128xbf16>
    %c0_1 = arith.constant 0 : index
    %c0_2 = arith.constant 0 : index
    %1 = vector.load %arg4[%c0_1, %c0_2] : memref<128x128xbf16, #tpu.memory_space<vmem>>, vector<128x128xbf16>
    %c0_3 = arith.constant 0 : index
    %c0_4 = arith.constant 0 : index
    %2 = vector.load %arg6[%c0_3, %c0_4] : memref<128x128xbf16, #tpu.memory_space<vmem>>, vector<128x128xbf16>
    %c0_5 = arith.constant 0 : index
    %c0_6 = arith.constant 0 : index
    %3 = vector.load %arg8[%c0_5, %c0_6] : memref<128x10xbf16, #tpu.memory_space<vmem>>, vector<128x10xbf16>
    %c0_7 = arith.constant 0 : index
    %c0_8 = arith.constant 0 : index
    %4 = vector.load %arg3[%c0_7, %c0_8] : memref<1x128xf32, #tpu.memory_space<vmem>>, vector<1x128xf32>
    %c0_9 = arith.constant 0 : index
    %c0_10 = arith.constant 0 : index
    %5 = vector.load %arg5[%c0_9, %c0_10] : memref<1x128xf32, #tpu.memory_space<vmem>>, vector<1x128xf32>
    %c0_11 = arith.constant 0 : index
    %c0_12 = arith.constant 0 : index
    %6 = vector.load %arg7[%c0_11, %c0_12] : memref<1x128xf32, #tpu.memory_space<vmem>>, vector<1x128xf32>
    %c0_13 = arith.constant 0 : index
    %c0_14 = arith.constant 0 : index
    %7 = vector.load %arg9[%c0_13, %c0_14] : memref<1x10xf32, #tpu.memory_space<vmem>>, vector<1x10xf32>
    %c0_15 = arith.constant 0 : index
    %c0_16 = arith.constant 0 : index
    %8 = vector.load %arg1[%c0_15, %c0_16] : memref<16x32xf32, #tpu.memory_space<vmem>>, vector<16x32xf32>
    %9 = arith.truncf %8 : vector<16x32xf32> to vector<16x32xbf16>
    %cst = arith.constant dense<0.000000e+00> : vector<16x128xf32>
    %10 = tpu.matmul %9, %0, %cst {dimension_numbers = #tpu.dot_dimension_numbers<[1], [0], [0], [1], [0, 0, 1, 1], [], []>} : vector<16x32xbf16>, vector<32x128xbf16>, vector<16x128xf32> -> vector<16x128xf32>
    %11 = vector.broadcast %4 : vector<1x128xf32> to vector<16x128xf32>
    %12 = arith.addf %10, %11 : vector<16x128xf32>
    %cst_17 = arith.constant 0.000000e+00 : f32
    %13 = vector.broadcast %cst_17 : f32 to vector<16x128xf32>
    %14 = arith.maximumf %12, %13 : vector<16x128xf32>
    %15 = arith.truncf %14 : vector<16x128xf32> to vector<16x128xbf16>
    %cst_18 = arith.constant dense<0.000000e+00> : vector<16x128xf32>
    %16 = tpu.matmul %15, %1, %cst_18 {dimension_numbers = #tpu.dot_dimension_numbers<[1], [0], [0], [1], [0, 0, 1, 1], [], []>} : vector<16x128xbf16>, vector<128x128xbf16>, vector<16x128xf32> -> vector<16x128xf32>
    %17 = vector.broadcast %5 : vector<1x128xf32> to vector<16x128xf32>
    %18 = arith.addf %16, %17 : vector<16x128xf32>
    %cst_19 = arith.constant 0.000000e+00 : f32
    %19 = vector.broadcast %cst_19 : f32 to vector<16x128xf32>
    %20 = arith.maximumf %18, %19 : vector<16x128xf32>
    %21 = arith.truncf %20 : vector<16x128xf32> to vector<16x128xbf16>
    %cst_20 = arith.constant dense<0.000000e+00> : vector<16x128xf32>
    %22 = tpu.matmul %21, %2, %cst_20 {dimension_numbers = #tpu.dot_dimension_numbers<[1], [0], [0], [1], [0, 0, 1, 1], [], []>} : vector<16x128xbf16>, vector<128x128xbf16>, vector<16x128xf32> -> vector<16x128xf32>
    %23 = vector.broadcast %6 : vector<1x128xf32> to vector<16x128xf32>
    %24 = arith.addf %22, %23 : vector<16x128xf32>
    %cst_21 = arith.constant 0.000000e+00 : f32
    %25 = vector.broadcast %cst_21 : f32 to vector<16x128xf32>
    %26 = arith.maximumf %24, %25 : vector<16x128xf32>
    %27 = arith.truncf %26 : vector<16x128xf32> to vector<16x128xbf16>
    %cst_22 = arith.constant dense<0.000000e+00> : vector<16x10xf32>
    %28 = tpu.matmul %27, %3, %cst_22 {dimension_numbers = #tpu.dot_dimension_numbers<[1], [0], [0], [1], [0, 0, 1, 1], [], []>} : vector<16x128xbf16>, vector<128x10xbf16>, vector<16x10xf32> -> vector<16x10xf32>
    %29 = vector.broadcast %7 : vector<1x10xf32> to vector<16x10xf32>
    %30 = arith.addf %28, %29 : vector<16x10xf32>
    %c0_23 = arith.constant 0 : index
    %c0_24 = arith.constant 0 : index
    %31 = vector.load %arg10[%c0_23, %c0_24] : memref<16x10xf32, #tpu.memory_space<vmem>>, vector<16x10xf32>
    tpu.vector_store %arg10[%c0_23, %c0_24], %30 {strides = array<i32>} : memref<16x10xf32, #tpu.memory_space<vmem>>, vector<16x10xf32>,
    return
  }
  func.func @transform_0(%arg0: i32) -> (i32, i32) {
    %c0_i32 = arith.constant 0 : i32
    %c0_i32_0 = arith.constant 0 : i32
    return %arg0, %c0_i32 : i32, i32
  }
  func.func @transform_1(%arg0: i32) -> (i32, i32) {
    %c0_i32 = arith.constant 0 : i32
    %c0_i32_0 = arith.constant 0 : i32
    %c0_i32_1 = arith.constant 0 : i32
    return %c0_i32, %c0_i32_0 : i32, i32
  }
  func.func @transform_2(%arg0: i32) -> (i32, i32) {
    %c0_i32 = arith.constant 0 : i32
    %c0_i32_0 = arith.constant 0 : i32
    %c0_i32_1 = arith.constant 0 : i32
    return %c0_i32, %c0_i32_0 : i32, i32
  }
  func.func @transform_3(%arg0: i32) -> (i32, i32) {
    %c0_i32 = arith.constant 0 : i32
    %c0_i32_0 = arith.constant 0 : i32
    %c0_i32_1 = arith.constant 0 : i32
    return %c0_i32, %c0_i32_0 : i32, i32
  }
  func.func @transform_4(%arg0: i32) -> (i32, i32) {
    %c0_i32 = arith.constant 0 : i32
    %c0_i32_0 = arith.constant 0 : i32
    %c0_i32_1 = arith.constant 0 : i32
    return %c0_i32, %c0_i32_0 : i32, i32
  }
  func.func @transform_5(%arg0: i32) -> (i32, i32) {
    %c0_i32 = arith.constant 0 : i32
    %c0_i32_0 = arith.constant 0 : i32
    %c0_i32_1 = arith.constant 0 : i32
    return %c0_i32, %c0_i32_0 : i32, i32
  }
  func.func @transform_6(%arg0: i32) -> (i32, i32) {
    %c0_i32 = arith.constant 0 : i32
    %c0_i32_0 = arith.constant 0 : i32
    %c0_i32_1 = arith.constant 0 : i32
    return %c0_i32, %c0_i32_0 : i32, i32
  }
  func.func @transform_7(%arg0: i32) -> (i32, i32) {
    %c0_i32 = arith.constant 0 : i32
    %c0_i32_0 = arith.constant 0 : i32
    %c0_i32_1 = arith.constant 0 : i32
    return %c0_i32, %c0_i32_0 : i32, i32
  }
  func.func @transform_8(%arg0: i32) -> (i32, i32) {
    %c0_i32 = arith.constant 0 : i32
    %c0_i32_0 = arith.constant 0 : i32
    %c0_i32_1 = arith.constant 0 : i32
    return %c0_i32, %c0_i32_0 : i32, i32
  }
  func.func @transform_9(%arg0: i32) -> (i32, i32) {
    %c0_i32 = arith.constant 0 : i32
    %c0_i32_0 = arith.constant 0 : i32
    return %arg0, %c0_i32 : i32, i32
  }
}

</mosaic_0001>

<bundles_post_ra>
// kernel: simplest_cnn1d_forward.1
= control target key start
LH: loop header
LB: loop body
LE: loop exit
PB: predicated region body
PF: predicated region fallthrough
CT: control target
= control target key end

     0   :  { %14 = vsyncpa [#allocation3], 0  ;;  %s1495_s0 = inlined_call_operand.hbm [shape: f32[32,32], index: 0, kind: input, shape index: {}]   ;;  %s1496_s1 = inlined_call_operand.vmem [shape: bf16[32,128], index: 1, kind: input, shape index: {}]   ;;  %s1497_s2 = inlined_call_operand.vmem [shape: f32[1,128], index: 2, kind: input, shape index: {}]   ;;  %s1498_s3 = inlined_call_operand.vmem [shape: bf16[128,128], index: 3, kind: input, shape index: {}]   ;;  %s1499_s4 = inlined_call_operand.vmem [shape: f32[1,128], index: 4, kind: input, shape index: {}]   ;;  %s1500_s5 = inlined_call_operand.hbm [shape: bf16[128,128], index: 5, kind: input, shape index: {}]   ;;  %s1501_s6 = inlined_call_operand.vmem [shape: f32[1,128], index: 6, kind: input, shape index: {}]   ;;  %s1502_s7 = inlined_call_operand.vmem [shape: bf16[128,10], index: 7, kind: input, shape index: {}]   ;;  %s1503_s8 = inlined_call_operand.vmem [shape: f32[1,10], index: 8, kind: input, shape index: {}]   ;;  %s1504_s9 = inlined_call_operand.vmem [shape: f32[32,10], index: 9, kind: output, shape index: {}]  }
   0x1   :  { %16 = vsyncpa [#allocation3 + $0x1], 0 }
   0x2   :  { %17 = vsyncpa [#allocation5], 0  ;;  %s1250_s30 = smov 0   ;;  %s1252_s10 = smov 0  }
   0x3   :  { %s1254_s11 = smov 0   ;;  %s1256_s12 = smov 0  }
   0x4 LB: > { %s1509_s13 = sadd.s32 4294967295, %s1190_s12   ;;  %p43_p0 = scmp.ne.s32.totalorder %s1182_s10, %s1178_s30  ;;  %s1190_s12 = sphi %s1256_s12, %s1522_s12   ;;  %s1186_s11 = sphi %s1254_s11, %s1525_s11   ;;  %s1182_s10 = sphi %s1252_s10, %s1524_s10   ;;  %s1178_s30 = sphi %s1250_s30, %s1523_s30  }
   0x5   : > { %p1272_p1 = scmp.eq.s32.totalorder %s1509_s13, 0  ;;  %p869_p2 = scmp.ge.s32.totalorder %s1190_s12, 1 }
   0x6   : > { %p248_p3 = scmp.lt.s32.totalorder %s1190_s12, 3  ;;  %s1192_s17 = smov [#allocation4]  }
   0x7   : > { %s1512_s14 = scalar_select %p1272_p1, 1, 0 }
   0x8   : > { %p1280_p4 = por %p1272_p1, %p43_p0  ;;  %p1284_p5 = pnand %p869_p2, %p248_p3 }
   0x9   : > { %s272_s18 = sshll.u32 %s1192_s17, 4  ;;  %s1297_s20 = sadd.s32 1, %s1190_s12   ;;  %s273_s18 = int_to_ptr.vmem [resolvable:$true] %s272_s18 }
   0xa   : > { %s1513_s15 = scalar_select %p1280_p4, 1, 0 }
   0xb   : > { %s1514_s16 = scalar_select %p1284_p5, 1, 0 }
   0xc   : > { %p1018_p6 = pneg %p1284_p5  ;;  %1516 = sst [smem:[#allocation8_spill]] %s1297_s20 }
   0xd   : > { %s30_s21 = sadd.s32 1, %s1186_s11  ;;  %s27_s22 = ssub.s32 %s1190_s12, %s1297_s20 }
   0xe   : > { %p1292_p7 = pnand %p1018_p6, %p1272_p1  ;;  %s1094_s25 = scalar_lea.hbm %s1500_s5, 1024 }
   0xf   : > { %p1095_p8 = scmp.ne.s32.totalorder %s1500_s5, %s1094_s25  ;;  %p1101_p12 = scmp.lt.u32.totalorder %s1094_s25, %s1500_s5 }
  0x10   : > { %p1096_p9 = pneg %p1292_p7 }
  0x12   : > { %p1097_p10 = pnand %p1096_p9, %p1095_p8 }
  0x14   : > { %p1098_p11 = pneg %p1097_p10 }
  0x16   : > { %p1103_p13 = pnand %p1101_p12, %p1098_p11 }
  0x18   : > { %1106 = shalt.err (!%p1103_p13)
}
  0x19   : > { %s1107_s30 = scalar_lea.vmem %s273_s18, 1024  ;;  %p1115_p6 = scmp.lt.s32.totalorder %s273_s18, %s273_s18 }
  0x1a   : > { %p1108_p0 = scmp.ne.s32.totalorder %s273_s18, %s1107_s30  ;;  %p1116_p1 = scmp.lt.s32.totalorder %s1107_s30, %s1107_s30 }
  0x1c   : > { %p1110_p2 = pnand %p1108_p0, %p1096_p9  ;;  %p1117_p4 = por %p1116_p1, %p1115_p6 }
  0x1e   : > { %p1111_p3 = pneg %p1110_p2 }
  0x20   : > { %p1118_p5 = pnand %p1117_p4, %p1111_p3 }
  0x22   : > { %1121 = shalt.err (!%p1118_p5)
}
  0x23   : > { %s1193_s17 = smov 64   ;;  %s1194_s23 = smov 4  }
  0x24   : > { %1021 = dma.hbm_to_vmem [thread:$0]  (!%p1292_p7), %s1500_s5, 1024, %s273_s18, [#allocation5], %s1193_s17, %s1193_s17, %s1194_s23  }
  0x25   : > { %p28_p8 = scmp.eq.s32.totalorder %s27_s22, 0  ;;  %p37_p9 = scmp.ne.s32.totalorder %s1186_s11, %s1182_s10 }
  0x26   : > { %p38_p1 = scmp.eq.s32.totalorder %s1190_s12, 0  ;;  %p1027_p4 = scmp.lt.s32.totalorder %s1190_s12, 2 }
  0x27   : > { %s1323_s26 = scalar_select %p28_p8, %s1186_s11, %s30_s21  }
  0x28   : > { %p39_p5 = por %p38_p1, %p37_p9  ;;  %s295_s27 = sand.u32 1, %s1186_s11  }
  0x29   : > { %s872_s28 = sshll.u32 %s295_s27, 4  ;;  %s913_s29 = sshll.u32 %s1190_s12, 8 }
  0x2a   : > { %s1330_s20 = scalar_lea.hbm %s1495_s0, %s913_s29  ;;  %s299_s18 = scalar_lea.vmem [#allocation2], %s872_s28 }
  0x2b   : > { %s306_s19 = sshll.u32 %s299_s18, 4  ;;  %p1334_p7 = pnand %p1027_p4, %p39_p5  ;;  %s1332_s19 = int_to_ptr.vmem [resolvable:$true] %s306_s19 }
  0x2c   : > { %s1338_s22 = scalar_lea.sflag [#allocation3], %s295_s27  ;;  %s1122_s17 = scalar_lea.hbm %s1330_s20, 256 }
  0x2d   : > { %p1123_p10 = scmp.ne.s32.totalorder %s1330_s20, %s1122_s17  ;;  %p1124_p11 = pneg %p1334_p7 }
  0x2e   : > { %s1127_s24 = scalar_lea.hbm %s1495_s0, 512  ;;  %p1128_p0 = scmp.lt.u32.totalorder %s1330_s20, %s1495_s0 }
  0x2f   : > { %p1125_p12 = pnand %p1124_p11, %p1123_p10  ;;  %p1129_p2 = scmp.lt.u32.totalorder %s1127_s24, %s1122_s17 }
  0x30   : > { %p1131_p6 = scmp.lt.u32.totalorder %s1122_s17, %s1330_s20 }
  0x31   : > { %p1126_p13 = pneg %p1125_p12  ;;  %p1130_p3 = por %p1129_p2, %p1128_p0 }
  0x33   : > { %p1132_p8 = por %p1131_p6, %p1130_p3 }
  0x35   : > { %p1133_p9 = pnand %p1132_p8, %p1126_p13 }
  0x37   : > { %1136 = shalt.err (!%p1133_p9)
}
  0x38   : > { %s1137_s27 = scalar_lea.vmem %s1332_s19, 256  ;;  %s1195_s29 = smov [#allocation2]  }
  0x39   : > { %p1138_p1 = scmp.ne.s32.totalorder %s1332_s19, %s1137_s27  ;;  %s1142_s30 = sshll.u32 %s1195_s29, 4  ;;  %s1143_s30 = int_to_ptr.vmem [resolvable:$false] %s1142_s30 }
  0x3a   : > { %s1144_s18 = scalar_lea.vmem %s1143_s30, 512  ;;  %p1145_p10 = scmp.lt.s32.totalorder %s1332_s19, %s1143_s30 }
  0x3b   : > { %p1140_p4 = pnand %p1138_p1, %p1124_p11  ;;  %p1146_p12 = scmp.lt.s32.totalorder %s1144_s18, %s1137_s27 }
  0x3d   : > { %p1141_p5 = pneg %p1140_p4  ;;  %p1147_p0 = por %p1146_p12, %p1145_p10 }
  0x3f   : > { %p1148_p2 = pnand %p1147_p0, %p1141_p5 }
  0x41   : > { %1151 = shalt.err (!%p1148_p2)
}
  0x42   : > { %s1196_s17 = smov 128   ;;  %s1197_s13 = smov 8  }
  0x43   : > { %1025 = dma.hbm_to_vmem [thread:$0]  (!%p1334_p7), %s1330_s20, 256, %s1332_s19, %s1338_s22, %s1196_s17, %s1196_s17, %s1197_s13  }
  0x44   : > { %p1518_p11 = scmp.ne.s32.totalorder %s1514_s16, 0 }
  0x45   : > { %s320_s23 = sand.u32 (!%p1518_p11), 1, %s1182_s10   ;;  %p1519_p13 = scmp.ne.s32.totalorder (!%p1518_p11), %s1513_s15, 0 }
  0x46   : > { %318 = sbr.rel (%p1518_p11) target bundleno = 968 (0x3c8), region = 56  ;;  %s876_s24 = sshll.u32 (!%p1518_p11), %s320_s23, 4 }
  0x47   : > { %s321_s25 = scalar_lea.sflag (!%p1518_p11), [#allocation3], %s320_s23  ;;  %s324_s28 = scalar_lea.vmem (!%p1518_p11), [#allocation2], %s876_s24 }
  0x4d   : > { %1169 = dma.done.wait (%p1519_p13), %s321_s25, 256  }
  0x4e   : > { %1171 = vsyncadd (%p1519_p13), %s321_s25, 4294967040  ;;  %p1520_p3 = scmp.ne.s32.totalorder %s1512_s14, 0 }
  0x50   : > { %1173 = dma.done.wait (%p1520_p3), [#allocation5], 1024  }
  0x51   : > { %1175 = vsyncadd (%p1520_p3), [#allocation5], 4294966272  ;;  %v1198_v0 = vmov 0.0   ;;  %vm1199_vm0 = vmmov 0   ;;  %v1068_v1 = vld [vmem:[%s1496_s1] sm:$0xff]   ;;  %v1069_v2 = vld [vmem:[%s1496_s1 + $0x8] sm:$0xff]  }
  0x52   : > { %944 = vmatprep.subr.bf16.mxu0 %v1198_v0  ;;  %948 = vmatprep.mubr.msk.bf16.mxu0 %vm1199_vm0, %v1198_v0  ;;  %v427_v3 = vld [vmem:[%s324_s28] sm:$0xff]  ;;  %v428_v4 = vld [vmem:[%s324_s28 + $0x8] sm:$0xff]  ;;  %vm448_vm1 = vcmask 261120   ;;  %s1521_s29 = sadd.s32 4294967295, %s1190_s12   ;;  %vm787_vm2 = vcmask 80896  }
  0x53   : > { %952 = vmatprep.subr.bf16.mxu1 %v1198_v0  ;;  %968 = vmatprep.mubr.msk.bf16.mxu1 %vm1199_vm0, %v1198_v0  ;;  %v1070_v5 = vld [vmem:[%s1498_s3] sm:$0xff]   ;;  %v429_v6 = vpack.c.bf16 %v428_v4, %v427_v3  ;;  %v1071_v7 = vld [vmem:[%s1498_s3 + $0x8] sm:$0xff]   ;;  %v1072_v8 = vld [vmem:[%s1498_s3 + $0x10] sm:$0xff]   ;;  %s878_s30 = sshll.u32 %s1521_s29, 1 }
  0x54   : > { %945 = vmatpush3.bf16.msra.mxu0 %v1068_v1  ;;  %953 = vmatpush3.bf16.msra.mxu1 %v1070_v5  ;;  %v1073_v9 = vld [vmem:[%s1498_s3 + $0x18] sm:$0xff]   ;;  %v1074_v10 = vld [vmem:[%s1498_s3 + $0x20] sm:$0xff]   ;;  %v1075_v11 = vld [vmem:[%s1498_s3 + $0x28] sm:$0xff]   ;;  %p365_p7 = scmp.lt.s32.totalorder %s878_s30, 3 }
  0x55   : > { %946 = vmatprep.subr.bf16.mxu0 %v1198_v0  ;;  %954 = vmatprep.subr.bf16.mxu1 %v1198_v0  ;;  %v1076_v12 = vld [vmem:[%s1498_s3 + $0x30] sm:$0xff]   ;;  %v1077_v13 = vld [vmem:[%s1498_s3 + $0x38] sm:$0xff]   ;;  %v1078_v14 = vld [vmem:[#allocation4] sm:$0xff]  }
  0x56   : > { %v1079_v15 = vld [vmem:[#allocation4 + $0x8] sm:$0xff]   ;;  %v1080_v16 = vld [vmem:[#allocation4 + $0x10] sm:$0xff]   ;;  %v1081_v17 = vld [vmem:[#allocation4 + $0x18] sm:$0xff]   ;;  %s1527_s30 = smov (!%p365_p7, %s878_s30), 3 }
  0x57   : > { %v1082_v18 = vld [vmem:[#allocation4 + $0x20] sm:$0xff]   ;;  %v1083_v19 = vld [vmem:[#allocation4 + $0x28] sm:$0xff]   ;;  %v1084_v30 = vld [vmem:[#allocation4 + $0x30] sm:$0xff]   ;;  %s879_s18 = sshll.u32 %s1527_s30, 3 }
  0x58   : > { %947 = vmatpush3.bf16.msra.mxu0 %v1069_v2  ;;  %955 = vmatpush3.bf16.msra.mxu1 %v1071_v7  ;;  %v880_v20 = vld [vmem:[%s1497_s2] ss:$0 sm:$0xff]  ;;  %v1085_v31 = vld [vmem:[#allocation4 + $0x38] sm:$0xff]   ;;  %v1087_v33 = vld [vmem:[%s1502_s7 + $0x8] sm:$0xff]   ;;  %s368_s25 = scalar_lea.vmem %s1504_s9, %s879_s18 }
  0x59   : > { %972 = vmatprep.subr.bf16.mxu0 %v1198_v0  ;;  %956 = vmatprep.subr.bf16.mxu1 %v1198_v0  ;;  %v1086_v32 = vld [vmem:[%s1502_s7] sm:$0xff]   ;;  %v1088_v34 = vld [vmem:[%s1502_s7 + $0x10] sm:$0xff]   ;;  %v1089_v35 = vld [vmem:[%s1502_s7 + $0x18] sm:$0xff]  }
  0x5a   : > { %v1090_v36 = vld [vmem:[%s1502_s7 + $0x20] sm:$0xff]   ;;  %v1091_v37 = vld [vmem:[%s1502_s7 + $0x28] sm:$0xff]   ;;  %v1092_v48 = vld [vmem:[%s1502_s7 + $0x30] sm:$0xff]  }
  0x5b   : > { %949 = vmatmul.mubr.msk.bf16.vlgmr.msra.gmra.mrb[0].mxu0 %vm448_vm1, %v429_v6  ;;  %v884_v38 = vld [vmem:[%s1499_s4] ss:$0 sm:$0xff]  ;;  %v1093_v49 = vld [vmem:[%s1502_s7 + $0x38] sm:$0xff]  }
  0x5c   : > { %988 = vmatprep.mubr.msk.bf16.mxu0 %vm1199_vm0, %v1198_v0  ;;  %957 = vmatpush3.bf16.msra.mxu1 %v1072_v8  ;;  %v893_v50 = vld [vmem:[%s1501_s6] ss:$0 sm:$0xff] }
  0x5d   : > { %958 = vmatprep.subr.bf16.mxu1 %v1198_v0  ;;  %973 = vmatpush3.bf16.msra.mxu0 %v1078_v14  ;;  %v902_v60 = vld [vmem:[%s1503_s8] ss:$0 sm:$0xff] }
  0x5e   : > { %974 = vmatprep.subr.bf16.mxu0 %v1198_v0 }
  0x60   : > { %959 = vmatpush3.bf16.msra.mxu1 %v1073_v9 }
  0x61   : > { %960 = vmatprep.subr.bf16.mxu1 %v1198_v0  ;;  %975 = vmatpush3.bf16.msra.mxu0 %v1079_v15 }
  0x62   : > { %976 = vmatprep.subr.bf16.mxu0 %v1198_v0 }
  0x64   : > { %961 = vmatpush3.bf16.msra.mxu1 %v1074_v10 }
  0x65   : > { %962 = vmatprep.subr.bf16.mxu1 %v1198_v0  ;;  %977 = vmatpush3.bf16.msra.mxu0 %v1080_v16 }
  0x66   : > { %978 = vmatprep.subr.bf16.mxu0 %v1198_v0 }
  0x68   : > { %963 = vmatpush3.bf16.msra.mxu1 %v1075_v11 }
  0x69   : > { %964 = vmatprep.subr.bf16.mxu1 %v1198_v0  ;;  %979 = vmatpush3.bf16.msra.mxu0 %v1081_v17 }
  0x6a   : > { %980 = vmatprep.subr.bf16.mxu0 %v1198_v0 }
  0x6c   : > { %965 = vmatpush3.bf16.msra.mxu1 %v1076_v12 }
  0x6d   : > { %966 = vmatprep.subr.bf16.mxu1 %v1198_v0  ;;  %981 = vmatpush3.bf16.msra.mxu0 %v1082_v18 }
  0x6e   : > { %982 = vmatprep.subr.bf16.mxu0 %v1198_v0 }
  0x70   : > { %967 = vmatpush3.bf16.msra.mxu1 %v1077_v13 }
  0x71   : > { %992 = vmatprep.subr.bf16.mxu1 %v1198_v0  ;;  %983 = vmatpush3.bf16.msra.mxu0 %v1083_v19 }
  0x72   : > { %984 = vmatprep.subr.bf16.mxu0 %v1198_v0 }
  0x75   : > { %985 = vmatpush3.bf16.msra.mxu0 %v1084_v30 }
  0x76   : > { %986 = vmatprep.subr.bf16.mxu0 %v1198_v0 }
  0x79   : > { %987 = vmatpush3.bf16.msra.mxu0 %v1085_v31 }
 0x12e   : > { %v486_v21 = vpop.f32.mrb[0].mxu0 }
 0x12f   : > { %v487_v22 = vadd.f32 %v880_v20, %v486_v21  ;;  %v950_v23 = vpop.f32.mrb[1].mxu0 }
 0x130   : > { %v489_v24 = vpop.f32.mrb[2].mxu0 }
 0x131   : > { %v490_v25 = vadd.f32 %v880_v20, %v489_v24  ;;  %v951_v26 = vpop.f32.mrb[3].mxu0  ;;  %v493_v27 = vmax.f32 %v487_v22, 0.0 }
 0x133   : > { %v494_v28 = vmax.f32 %v490_v25, 0.0 }
 0x135   : > { %v495_v29 = vpack.c.bf16 %v494_v28, %v493_v27 }
 0x137   : > { %969 = vmatmul.mubr.bf16.vlgmr.msra.gmra.mrb[0].mxu1 %v495_v29 }
 0x138   : > { %1008 = vmatprep.mubr.msk.bf16.mxu1 %vm1199_vm0, %v1198_v0  ;;  %993 = vmatpush3.bf16.msra.mxu1 %v1086_v32 }
 0x139   : > { %994 = vmatprep.subr.bf16.mxu1 %v1198_v0 }
 0x13c   : > { %995 = vmatpush3.bf16.msra.mxu1 %v1087_v33 }
 0x13d   : > { %996 = vmatprep.subr.bf16.mxu1 %v1198_v0 }
 0x140   : > { %997 = vmatpush3.bf16.msra.mxu1 %v1088_v34 }
 0x141   : > { %998 = vmatprep.subr.bf16.mxu1 %v1198_v0 }
 0x144   : > { %999 = vmatpush3.bf16.msra.mxu1 %v1089_v35 }
 0x145   : > { %1000 = vmatprep.subr.bf16.mxu1 %v1198_v0 }
 0x148   : > { %1001 = vmatpush3.bf16.msra.mxu1 %v1090_v36 }
 0x149   : > { %1002 = vmatprep.subr.bf16.mxu1 %v1198_v0 }
 0x14c   : > { %1003 = vmatpush3.bf16.msra.mxu1 %v1091_v37 }
 0x14d   : > { %1004 = vmatprep.subr.bf16.mxu1 %v1198_v0 }
 0x150   : > { %1005 = vmatpush3.bf16.msra.mxu1 %v1092_v48 }
 0x151   : > { %1006 = vmatprep.subr.bf16.mxu1 %v1198_v0 }
 0x154   : > { %1007 = vmatpush3.bf16.msra.mxu1 %v1093_v49 }
 0x20a   : > { %v584_v39 = vpop.f32.mrb[0].mxu1 }
 0x20b   : > { %v585_v40 = vadd.f32 %v884_v38, %v584_v39  ;;  %v970_v41 = vpop.f32.mrb[1].mxu1 }
 0x20c   : > { %v587_v42 = vpop.f32.mrb[2].mxu1 }
 0x20d   : > { %v588_v43 = vadd.f32 %v884_v38, %v587_v42  ;;  %v971_v44 = vpop.f32.mrb[3].mxu1  ;;  %v591_v45 = vmax.f32 %v585_v40, 0.0 }
 0x20f   : > { %v592_v46 = vmax.f32 %v588_v43, 0.0 }
 0x211   : > { %v593_v47 = vpack.c.bf16 %v592_v46, %v591_v45 }
 0x213   : > { %989 = vmatmul.mubr.bf16.vlgmr.msra.gmra.mrb[4].mxu0 %v593_v47 }
 0x2e6   : > { %v682_v51 = vpop.f32.mrb[4].mxu0 }
 0x2e7   : > { %v683_v52 = vadd.f32 %v893_v50, %v682_v51  ;;  %v990_v53 = vpop.f32.mrb[5].mxu0 }
 0x2e8   : > { %v685_v54 = vpop.f32.mrb[6].mxu0 }
 0x2e9   : > { %v686_v55 = vadd.f32 %v893_v50, %v685_v54  ;;  %v991_v56 = vpop.f32.mrb[7].mxu0  ;;  %v689_v57 = vmax.f32 %v683_v52, 0.0 }
 0x2eb   : > { %v690_v58 = vmax.f32 %v686_v55, 0.0 }
 0x2ed   : > { %v691_v59 = vpack.c.bf16 %v690_v58, %v689_v57 }
 0x2ef   : > { %1009 = vmatmul.mubr.bf16.vlgmr.msra.gmra.mrb[4].mxu1 %v691_v59 }
 0x3c2   : > { %v780_v61 = vpop.f32.mrb[4].mxu1 }
 0x3c3   : > { %v781_v62 = vadd.f32 %v902_v60, %v780_v61  ;;  %v1010_v63 = vpop.f32.mrb[5].mxu1 }
 0x3c4   : > { %v783_v0 = vpop.f32.mrb[6].mxu1 }
 0x3c5   : > { %788 = vst.msk [vmem:[%s368_s25] sm:$0xff] %vm787_vm2, %v781_v62  ;;  %v784_v1 = vadd.f32 %v902_v60, %v783_v0  ;;  %v1011_v2 = vpop.f32.mrb[7].mxu1 }
 0x3c7   : > { %789 = vst.msk [vmem:[%s368_s25 + $0x8] sm:$0xff] %vm787_vm2, %v784_v1 }
 0x3c8 PF: > { %s1522_s12 = sld [smem:[#allocation8_spill]]  ;;  %s1523_s30 = smov %s1182_s10 }
 0x3c9   : > { %s1524_s10 = smov %s1186_s11  ;;  %s1525_s11 = smov %s1323_s26 }
 0x3ce   : > { %p20_p6 = scmp.ge.s32.totalorder %s1522_s12, 4  }
 0x3d0   :  { %22 = sbr.rel (!%p20_p6) target bundleno = 4 (0x4), region = 100 }
 0x3d7   :  { %812 = vsyncpa [#allocation3], 1 }
 0x3d8   :  { %814 = vsyncpa [#allocation3 + $0x1], 1 }
 0x3d9   :  { %815 = vsyncpa [#allocation5], 1 }

</bundles_post_ra>
